<compile_context>
chip_gen: v6e
topology: v6e:2x2x1
jax: 0.10.0
libtpu: 0.0.40
codegen_flags: <defaults>
</compile_context>

<pallas_src>
import jax
import jax.numpy as jnp
from jax import lax
from jax.experimental import pallas as pl
from jax.experimental.pallas import tpu as pltpu


def _round_up(x, m):
    return ((x + m - 1) // m) * m


# --------------------------------------------------------------------------
# Pallas pass: per-anchor quantities (lane-dense over anchors) + partial sums
# --------------------------------------------------------------------------
def _make_pass1_kernel(n_valid, temperature, pos_w, neg_w):
    inv_t = 1.0 / float(temperature)
    eps = 1e-10

    def _ssum(x):  # full sum of a 2-D tile as (1, 1): lane reduce -> sublane reduce
        return jnp.sum(jnp.sum(x, axis=1, keepdims=True), axis=0, keepdims=True)

    def kernel(locs_ref, conf_ref, confk_ref, gt_ref, qdata_ref, stats_ref):
        f32 = jnp.float32
        t = pl.program_id(1)
        tn = gt_ref.shape[-1]

        loc = locs_ref[0, 0:4, :].astype(f32)       # (4, TN)
        loc_k = locs_ref[0, 4:8, :].astype(f32)     # (4, TN)
        loc_gt = locs_ref[0, 8:12, :].astype(f32)   # (4, TN)
        conf = conf_ref[0].astype(f32)              # (C, TN)
        conf_k = confk_ref[0].astype(f32)           # (C, TN)
        gt = gt_ref[0]                              # (1, TN) int32
        C = conf.shape[0]

        lane = lax.broadcasted_iota(jnp.int32, (1, tn), 1)
        valid_f = (t * tn + lane < n_valid).astype(f32)      # (1, TN) padding mask

        pos_f = (gt > 0).astype(f32)                # (1, TN); padded labels are 0

        # --- hint loss: SSE (padded columns are zero -> contribute nothing) ---
        dh = loc - loc_k
        hint_loc = _ssum(dh * dh)
        dc = conf - conf_k
        hint_conf = _ssum(dc * dc)

        # --- localization terms on positive anchors ---
        dl = loc - loc_gt
        adl = jnp.abs(dl)
        sl1 = jnp.where(adl < 1.0, 0.5 * dl * dl, adl - 0.5)   # SmoothL1, beta=1
        sl1_sum = _ssum(sl1 * pos_f)
        sse_loc = _ssum(dl * dl * pos_f)
        dk = loc_k - loc_gt
        sse_lock = _ssum(dk * dk * pos_f)
        npos = _ssum(pos_f)

        # --- per-anchor cross entropy (single pass over the conf tile) ---
        mx = jnp.max(conf, axis=0, keepdims=True)
        ex = jnp.exp(conf - mx)
        lse = jnp.log(jnp.sum(ex, axis=0, keepdims=True)) + mx
        cls = lax.broadcasted_iota(jnp.int32, (C, tn), 0)
        onehot = (cls == gt).astype(f32)
        gathered = jnp.sum(conf * onehot, axis=0, keepdims=True)
        ce = (lse - gathered) * valid_f                      # (1, TN)
        loss_c = jnp.where(pos_f > 0, 0.0, ce)               # positives & padding -> 0

        # --- per-anchor temperature-softened weighted KL term ---
        # TODO(synk): reference uses log(softmax(x/T) + 1e-10); the fused
        # log-softmax below differs from it only near-underflow (~1e-10 level).
        st = conf * inv_t
        st = st - jnp.max(st, axis=0, keepdims=True)
        log_ps = st - jnp.log(jnp.sum(jnp.exp(st), axis=0, keepdims=True))
        tt = conf_k * inv_t
        tt = tt - jnp.max(tt, axis=0, keepdims=True)
        et = jnp.exp(tt)
        qt = et / jnp.sum(et, axis=0, keepdims=True) + eps   # exact divide
        w = jnp.where(lax.broadcasted_iota(jnp.int32, (C, 1), 0) == 0,
                      float(neg_w), float(pos_w))            # (C, 1)
        soft_pa = -jnp.sum(w * qt * log_ps, axis=0, keepdims=True) * valid_f

        # lane-dense per-anchor outputs needed by the selection step
        qdata_ref[0] = jnp.concatenate([loss_c, ce, soft_pa, pos_f], axis=0)  # (4, TN)

        # tiny per-(batch, tile) partial sums (scalar placed in lane 0 of its row)
        lane0 = lax.broadcasted_iota(jnp.int32, (1, 128), 1) == 0

        def srow(s):
            return jnp.where(lane0, s, 0.0)

        stats_ref[0, 0] = jnp.concatenate(
            [srow(hint_loc), srow(hint_conf), srow(sl1_sum), srow(sse_loc),
             srow(sse_lock), srow(npos), jnp.zeros((2, 128), f32)], axis=0)  # (8, 128)

    return kernel


# --------------------------------------------------------------------------
# Wrapper: layout plumbing + O(B*N) selection / reductions + scalar combine
# --------------------------------------------------------------------------
def object_distillation_loss(predictions, knowledge, targets, config):
    loc, conf = predictions
    loc_k, conf_k = knowledge
    B, N, C = conf.shape
    assert C == config['num_classes']

    loc_gt = targets[..., :-1]
    gt_lab = targets[..., -1:]

    # lane-dense layout: anchors on the 128-lane axis, padded to the tile size
    TN = min(2048, _round_up(N, 128))
    Np = _round_up(N, TN)
    pad = Np - N
    nt = Np // TN

    def lane_major(x):                      # [B, N, F] -> [B, F, Np] (dtype kept)
        x = jnp.transpose(x, (0, 2, 1))
        return jnp.pad(x, ((0, 0), (0, 0), (0, pad)))

    # fuse the three 4-row loc arrays into one [B, 12, Np] input
    locs_l = lane_major(jnp.concatenate([loc, loc_k, loc_gt], axis=-1))
    conf_l = lane_major(conf)
    confk_l = lane_major(conf_k)
    gt_l = lane_major(gt_lab.astype(jnp.int32))

    qdata, stats = pl.pallas_call(
        _make_pass1_kernel(N, config['temperature'],
                           config['positive_weight'], config['negative_weight']),
        out_shape=(jax.ShapeDtypeStruct((B, 4, Np), jnp.float32),
                   jax.ShapeDtypeStruct((B, nt, 8, 128), jnp.float32)),
        grid_spec=pltpu.PrefetchScalarGridSpec(
            num_scalar_prefetch=0,
            grid=(B, nt),
            in_specs=[pl.BlockSpec((1, 12, TN), lambda b, t: (b, 0, t)),
                      pl.BlockSpec((1, C, TN), lambda b, t: (b, 0, t)),
                      pl.BlockSpec((1, C, TN), lambda b, t: (b, 0, t)),
                      pl.BlockSpec((1, 1, TN), lambda b, t: (b, 0, t))],
            out_specs=[pl.BlockSpec((1, 4, TN), lambda b, t: (b, 0, t)),
                       pl.BlockSpec((1, 1, 8, 128), lambda b, t: (b, t, 0, 0))]),
        compiler_params=pltpu.CompilerParams(
            dimension_semantics=("parallel", "parallel"),
            vmem_limit_bytes=32 * 1024 * 1024),
    )(locs_l, conf_l, confk_l, gt_l)

    # ---- tiny partial-sum gather ----
    stat_sums = jnp.sum(stats, axis=(0, 1, 3))               # (8,)
    hint_loc_sse, hint_conf_sse = stat_sums[0], stat_sums[1]
    sl1_sum, sse_loc, sse_lock = stat_sums[2], stat_sums[3], stat_sums[4]
    num_pos_b = jnp.sum(stats[:, :, 5, :], axis=(1, 2))      # [B]
    num_pos_total = jnp.sum(num_pos_b)

    loss_c = qdata[:, 0, :]                                   # [B, Np]
    ce_row = qdata[:, 1, :]
    soft_row = qdata[:, 2, :]
    pos_row = qdata[:, 3, :]

    num_neg_b = jnp.minimum(float(config['neg_pos']) * num_pos_b,
                            float(N - 1)).astype(jnp.int32)   # [B]

    # Exact "rank < num_neg" hard-negative mining via a per-batch threshold
    # (value at descending-sort position num_neg-1) with stable index tie-break.
    # Padded anchors carry loss_c = 0 and zeroed ce/soft, so they never change
    # real-anchor ranks nor contribute to the sums.
    sorted_desc = -jnp.sort(-loss_c, axis=-1)                 # [B, Np] descending
    k_idx = jnp.clip(num_neg_b - 1, 0, Np - 1)[:, None]
    thr = jnp.take_along_axis(sorted_desc, k_idx, axis=-1)    # [B, 1]
    gt_cnt = jnp.sum((loss_c > thr).astype(jnp.int32), axis=-1, keepdims=True)
    tie = loss_c == thr
    tie_prefix = jnp.cumsum(tie.astype(jnp.int32), axis=-1) - tie.astype(jnp.int32)
    neg_sel = (loss_c > thr) | (tie & (gt_cnt + tie_prefix < num_neg_b[:, None]))
    neg_sel = jnp.logical_and(neg_sel, num_neg_b[:, None] > 0)
    sel = jnp.logical_or(pos_row > 0, neg_sel)                # positives ∪ hard negs

    ce_sum = jnp.sum(jnp.where(sel, ce_row, 0.0))
    soft_sum = jnp.sum(jnp.where(sel, soft_row, 0.0))

    # ---- scalar loss combination (matches the PyTorch reference) ----
    loss_hint = hint_loc_sse / (B * N * 4) + hint_conf_sse / (B * N * C)

    n_pos_el = num_pos_total * 4.0
    mse_loc = sse_loc / n_pos_el
    mse_lock = sse_lock / n_pos_el
    loss_br = jnp.where(mse_loc + config['regression_margin'] > mse_lock,
                        mse_loc * 0.5, 0.0)
    loss_reg = sl1_sum + loss_br

    u = config['u']
    loss_cls = u * ce_sum + (1.0 - u) * soft_sum
    # NOTE: division by num_pos_total is unguarded, exactly like the reference
    # (a batch with zero positives yields inf/nan there as well).
    return (loss_cls + config['regression_weight'] * loss_reg) / num_pos_total \
        + loss_hint * 0.5


if __name__ == "__main__":
    config = dict(
        num_classes=8,
        neg_pos=3,
        temperature=2.0,
        u=0.5,
        positive_weight=1.0,
        negative_weight=1.5,
        regression_margin=0.1,
        regression_weight=1.0,
    )

    B, N, C = 2, 128, config['num_classes']
    key = jax.random.PRNGKey(0)
    k1, k2, k3, k4, k5, k6 = jax.random.split(key, 6)

    loc = jax.random.normal(k1, (B, N, 4), jnp.float32)
    conf = jax.random.normal(k2, (B, N, C), jnp.float32)
    loc_k = loc + 0.1 * jax.random.normal(k3, (B, N, 4), jnp.float32)
    conf_k = conf + 0.1 * jax.random.normal(k4, (B, N, C), jnp.float32)

    loc_gt = jax.random.normal(k5, (B, N, 4), jnp.float32)
    labels = jax.random.randint(k6, (B, N), 0, C)
    labels = labels.at[:, 0].set(1)               # guarantee >=1 positive / batch
    targets = jnp.concatenate(
        [loc_gt, labels.astype(jnp.float32)[..., None]], axis=-1)  # [B, N, 5]

    out = object_distillation_loss((loc, conf), (loc_k, conf_k), targets, config)
    out = jax.block_until_ready(out)
    assert jnp.isfinite(out), out
    print("KERNEL_OK")
</pallas_src>

<mosaic_0001>
module attributes {stable_mosaic.version = 11 : i64} {
  func.func @kernel(%arg0: i32, %arg1: i32, %arg2: memref<1x12x128xf32, #tpu.memory_space<vmem>>, %arg3: memref<1x8x128xf32, #tpu.memory_space<vmem>>, %arg4: memref<1x8x128xf32, #tpu.memory_space<vmem>>, %arg5: memref<1x1x128xi32, #tpu.memory_space<vmem>>, %arg6: memref<1x4x128xf32, #tpu.memory_space<vmem>>, %arg7: memref<1x1x8x128xf32, #tpu.memory_space<vmem>>) attributes {dimension_semantics = [#tpu.dimension_semantics<parallel>, #tpu.dimension_semantics<parallel>], iteration_bounds = array<i64: 2, 1>, scalar_prefetch = 0 : i64, scratch_operands = 0 : i64, tpu.core_type = #tpu.core_type<tc>, window_params = [{transform_indices = @transform_0, window_bounds = array<i64: 1, 12, 128>}, {transform_indices = @transform_1, window_bounds = array<i64: 1, 8, 128>}, {transform_indices = @transform_2, window_bounds = array<i64: 1, 8, 128>}, {transform_indices = @transform_3, window_bounds = array<i64: 1, 1, 128>}, {transform_indices = @transform_4, window_bounds = array<i64: 1, 4, 128>}, {transform_indices = @transform_5, window_bounds = array<i64: 1, 1, 8, 128>}]} {
    %c0 = arith.constant 0 : index
    %c0_0 = arith.constant 0 : index
    %c0_1 = arith.constant 0 : index
    %0 = vector.load %arg2[%c0, %c0_0, %c0_1] : memref<1x12x128xf32, #tpu.memory_space<vmem>>, vector<1x4x128xf32>
    %1 = vector.shape_cast %0 : vector<1x4x128xf32> to vector<4x128xf32>
    %c0_2 = arith.constant 0 : index
    %c4 = arith.constant 4 : index
    %c0_3 = arith.constant 0 : index
    %2 = vector.load %arg2[%c0_2, %c4, %c0_3] : memref<1x12x128xf32, #tpu.memory_space<vmem>>, vector<1x4x128xf32>
    %3 = vector.shape_cast %2 : vector<1x4x128xf32> to vector<4x128xf32>
    %c0_4 = arith.constant 0 : index
    %c8 = arith.constant 8 : index
    %c0_5 = arith.constant 0 : index
    %4 = vector.load %arg2[%c0_4, %c8, %c0_5] : memref<1x12x128xf32, #tpu.memory_space<vmem>>, vector<1x4x128xf32>
    %5 = vector.shape_cast %4 : vector<1x4x128xf32> to vector<4x128xf32>
    %c0_6 = arith.constant 0 : index
    %c0_7 = arith.constant 0 : index
    %c0_8 = arith.constant 0 : index
    %6 = vector.load %arg3[%c0_6, %c0_7, %c0_8] : memref<1x8x128xf32, #tpu.memory_space<vmem>>, vector<1x8x128xf32>
    %7 = vector.shape_cast %6 : vector<1x8x128xf32> to vector<8x128xf32>
    %c0_9 = arith.constant 0 : index
    %c0_10 = arith.constant 0 : index
    %c0_11 = arith.constant 0 : index
    %8 = vector.load %arg4[%c0_9, %c0_10, %c0_11] : memref<1x8x128xf32, #tpu.memory_space<vmem>>, vector<1x8x128xf32>
    %9 = vector.shape_cast %8 : vector<1x8x128xf32> to vector<8x128xf32>
    %c0_12 = arith.constant 0 : index
    %c0_13 = arith.constant 0 : index
    %c0_14 = arith.constant 0 : index
    %10 = vector.load %arg5[%c0_12, %c0_13, %c0_14] : memref<1x1x128xi32, #tpu.memory_space<vmem>>, vector<1x1x128xi32>
    %11 = vector.shape_cast %10 : vector<1x1x128xi32> to vector<1x128xi32>
    %12 = tpu.iota {dimensions = array<i32: 1>} : vector<1x128xi32>
    %c128_i32 = arith.constant 128 : i32
    %13 = arith.muli %arg1, %c128_i32 : i32
    %14 = vector.broadcast %13 : i32 to vector<1x128xi32>
    %15 = arith.addi %14, %12 : vector<1x128xi32>
    %c128_i32_15 = arith.constant 128 : i32
    %16 = vector.broadcast %c128_i32_15 : i32 to vector<1x128xi32>
    %17 = arith.cmpi slt, %15, %16 : vector<1x128xi32>
    %18 = arith.extui %17 : vector<1x128xi1> to vector<1x128xi32>
    %19 = arith.sitofp %18 : vector<1x128xi32> to vector<1x128xf32>
    %c0_i32 = arith.constant 0 : i32
    %20 = vector.broadcast %c0_i32 : i32 to vector<1x128xi32>
    %21 = arith.cmpi sgt, %11, %20 : vector<1x128xi32>
    %22 = arith.extui %21 : vector<1x128xi1> to vector<1x128xi32>
    %23 = arith.sitofp %22 : vector<1x128xi32> to vector<1x128xf32>
    %24 = arith.subf %1, %3 : vector<4x128xf32>
    %25 = arith.mulf %24, %24 : vector<4x128xf32>
    %cst = arith.constant dense<0.000000e+00> : vector<4xf32>
    %26 = vector.multi_reduction <add>, %25, %cst [1] : vector<4x128xf32> to vector<4xf32>
    %27 = vector.shape_cast %26 : vector<4xf32> to vector<4x1xf32>
    %cst_16 = arith.constant dense<0.000000e+00> : vector<1xf32>
    %28 = vector.multi_reduction <add>, %27, %cst_16 [0] : vector<4x1xf32> to vector<1xf32>
    %29 = vector.shape_cast %28 : vector<1xf32> to vector<1x1xf32>
    %30 = arith.subf %7, %9 : vector<8x128xf32>
    %31 = arith.mulf %30, %30 : vector<8x128xf32>
    %cst_17 = arith.constant dense<0.000000e+00> : vector<8xf32>
    %32 = vector.multi_reduction <add>, %31, %cst_17 [1] : vector<8x128xf32> to vector<8xf32>
    %33 = vector.shape_cast %32 : vector<8xf32> to vector<8x1xf32>
    %cst_18 = arith.constant dense<0.000000e+00> : vector<1xf32>
    %34 = vector.multi_reduction <add>, %33, %cst_18 [0] : vector<8x1xf32> to vector<1xf32>
    %35 = vector.shape_cast %34 : vector<1xf32> to vector<1x1xf32>
    %36 = arith.subf %1, %5 : vector<4x128xf32>
    %37 = math.absf %36 : vector<4x128xf32>
    %cst_19 = arith.constant 1.000000e+00 : f32
    %38 = vector.broadcast %cst_19 : f32 to vector<4x128xf32>
    %39 = arith.cmpf olt, %37, %38 : vector<4x128xf32>
    %cst_20 = arith.constant 5.000000e-01 : f32
    %40 = vector.broadcast %cst_20 : f32 to vector<4x128xf32>
    %41 = arith.mulf %40, %36 : vector<4x128xf32>
    %42 = arith.mulf %41, %36 : vector<4x128xf32>
    %cst_21 = arith.constant 5.000000e-01 : f32
    %43 = vector.broadcast %cst_21 : f32 to vector<4x128xf32>
    %44 = arith.subf %37, %43 : vector<4x128xf32>
    %45 = arith.select %39, %42, %44 : vector<4x128xi1>, vector<4x128xf32>
    %46 = vector.broadcast %23 : vector<1x128xf32> to vector<4x128xf32>
    %47 = arith.mulf %45, %46 : vector<4x128xf32>
    %cst_22 = arith.constant dense<0.000000e+00> : vector<4xf32>
    %48 = vector.multi_reduction <add>, %47, %cst_22 [1] : vector<4x128xf32> to vector<4xf32>
    %49 = vector.shape_cast %48 : vector<4xf32> to vector<4x1xf32>
    %cst_23 = arith.constant dense<0.000000e+00> : vector<1xf32>
    %50 = vector.multi_reduction <add>, %49, %cst_23 [0] : vector<4x1xf32> to vector<1xf32>
    %51 = vector.shape_cast %50 : vector<1xf32> to vector<1x1xf32>
    %52 = arith.mulf %36, %36 : vector<4x128xf32>
    %53 = vector.broadcast %23 : vector<1x128xf32> to vector<4x128xf32>
    %54 = arith.mulf %52, %53 : vector<4x128xf32>
    %cst_24 = arith.constant dense<0.000000e+00> : vector<4xf32>
    %55 = vector.multi_reduction <add>, %54, %cst_24 [1] : vector<4x128xf32> to vector<4xf32>
    %56 = vector.shape_cast %55 : vector<4xf32> to vector<4x1xf32>
    %cst_25 = arith.constant dense<0.000000e+00> : vector<1xf32>
    %57 = vector.multi_reduction <add>, %56, %cst_25 [0] : vector<4x1xf32> to vector<1xf32>
    %58 = vector.shape_cast %57 : vector<1xf32> to vector<1x1xf32>
    %59 = arith.subf %3, %5 : vector<4x128xf32>
    %60 = arith.mulf %59, %59 : vector<4x128xf32>
    %61 = vector.broadcast %23 : vector<1x128xf32> to vector<4x128xf32>
    %62 = arith.mulf %60, %61 : vector<4x128xf32>
    %cst_26 = arith.constant dense<0.000000e+00> : vector<4xf32>
    %63 = vector.multi_reduction <add>, %62, %cst_26 [1] : vector<4x128xf32> to vector<4xf32>
    %64 = vector.shape_cast %63 : vector<4xf32> to vector<4x1xf32>
    %cst_27 = arith.constant dense<0.000000e+00> : vector<1xf32>
    %65 = vector.multi_reduction <add>, %64, %cst_27 [0] : vector<4x1xf32> to vector<1xf32>
    %66 = vector.shape_cast %65 : vector<1xf32> to vector<1x1xf32>
    %cst_28 = arith.constant dense<0.000000e+00> : vector<1xf32>
    %67 = vector.multi_reduction <add>, %23, %cst_28 [1] : vector<1x128xf32> to vector<1xf32>
    %68 = vector.shape_cast %67 : vector<1xf32> to vector<1x1xf32>
    %cst_29 = arith.constant dense<0.000000e+00> : vector<1xf32>
    %69 = vector.multi_reduction <add>, %68, %cst_29 [0] : vector<1x1xf32> to vector<1xf32>
    %70 = vector.shape_cast %69 : vector<1xf32> to vector<1x1xf32>
    %cst_30 = arith.constant dense<0xFF800000> : vector<128xf32>
    %71 = vector.multi_reduction <maximumf>, %7, %cst_30 [0] : vector<8x128xf32> to vector<128xf32>
    %72 = vector.shape_cast %71 : vector<128xf32> to vector<1x128xf32>
    %73 = vector.broadcast %72 : vector<1x128xf32> to vector<8x128xf32>
    %74 = arith.subf %7, %73 : vector<8x128xf32>
    %75 = math.exp %74 : vector<8x128xf32>
    %cst_31 = arith.constant dense<0.000000e+00> : vector<128xf32>
    %76 = vector.multi_reduction <add>, %75, %cst_31 [0] : vector<8x128xf32> to vector<128xf32>
    %77 = vector.shape_cast %76 : vector<128xf32> to vector<1x128xf32>
    %78 = math.log %77 : vector<1x128xf32>
    %79 = arith.addf %78, %72 : vector<1x128xf32>
    %80 = tpu.iota {dimensions = array<i32: 0>} : vector<8x128xi32>
    %81 = vector.broadcast %11 : vector<1x128xi32> to vector<8x128xi32>
    %82 = arith.cmpi eq, %80, %81 : vector<8x128xi32>
    %83 = arith.extui %82 : vector<8x128xi1> to vector<8x128xi32>
    %84 = arith.sitofp %83 : vector<8x128xi32> to vector<8x128xf32>
    %85 = arith.mulf %7, %84 : vector<8x128xf32>
    %cst_32 = arith.constant dense<0.000000e+00> : vector<128xf32>
    %86 = vector.multi_reduction <add>, %85, %cst_32 [0] : vector<8x128xf32> to vector<128xf32>
    %87 = vector.shape_cast %86 : vector<128xf32> to vector<1x128xf32>
    %88 = arith.subf %79, %87 : vector<1x128xf32>
    %89 = arith.mulf %88, %19 : vector<1x128xf32>
    %cst_33 = arith.constant 0.000000e+00 : f32
    %90 = vector.broadcast %cst_33 : f32 to vector<1x128xf32>
    %91 = arith.cmpf ogt, %23, %90 : vector<1x128xf32>
    %cst_34 = arith.constant 0.000000e+00 : f32
    %92 = vector.broadcast %cst_34 : f32 to vector<1x128xf32>
    %93 = arith.select %91, %92, %89 : vector<1x128xi1>, vector<1x128xf32>
    %cst_35 = arith.constant 5.000000e-01 : f32
    %94 = vector.broadcast %cst_35 : f32 to vector<8x128xf32>
    %95 = arith.mulf %7, %94 : vector<8x128xf32>
    %cst_36 = arith.constant dense<0xFF800000> : vector<128xf32>
    %96 = vector.multi_reduction <maximumf>, %95, %cst_36 [0] : vector<8x128xf32> to vector<128xf32>
    %97 = vector.shape_cast %96 : vector<128xf32> to vector<1x128xf32>
    %98 = vector.broadcast %97 : vector<1x128xf32> to vector<8x128xf32>
    %99 = arith.subf %95, %98 : vector<8x128xf32>
    %100 = math.exp %99 : vector<8x128xf32>
    %cst_37 = arith.constant dense<0.000000e+00> : vector<128xf32>
    %101 = vector.multi_reduction <add>, %100, %cst_37 [0] : vector<8x128xf32> to vector<128xf32>
    %102 = vector.shape_cast %101 : vector<128xf32> to vector<1x128xf32>
    %103 = math.log %102 : vector<1x128xf32>
    %104 = vector.broadcast %103 : vector<1x128xf32> to vector<8x128xf32>
    %105 = arith.subf %99, %104 : vector<8x128xf32>
    %cst_38 = arith.constant 5.000000e-01 : f32
    %106 = vector.broadcast %cst_38 : f32 to vector<8x128xf32>
    %107 = arith.mulf %9, %106 : vector<8x128xf32>
    %cst_39 = arith.constant dense<0xFF800000> : vector<128xf32>
    %108 = vector.multi_reduction <maximumf>, %107, %cst_39 [0] : vector<8x128xf32> to vector<128xf32>
    %109 = vector.shape_cast %108 : vector<128xf32> to vector<1x128xf32>
    %110 = vector.broadcast %109 : vector<1x128xf32> to vector<8x128xf32>
    %111 = arith.subf %107, %110 : vector<8x128xf32>
    %112 = math.exp %111 : vector<8x128xf32>
    %cst_40 = arith.constant dense<0.000000e+00> : vector<128xf32>
    %113 = vector.multi_reduction <add>, %112, %cst_40 [0] : vector<8x128xf32> to vector<128xf32>
    %114 = vector.shape_cast %113 : vector<128xf32> to vector<1x128xf32>
    %115 = vector.broadcast %114 : vector<1x128xf32> to vector<8x128xf32>
    %116 = arith.divf %112, %115 : vector<8x128xf32>
    %cst_41 = arith.constant 1.000000e-10 : f32
    %117 = vector.broadcast %cst_41 : f32 to vector<8x128xf32>
    %118 = arith.addf %116, %117 : vector<8x128xf32>
    %119 = tpu.iota {dimensions = array<i32: 0>} : vector<8x1xi32>
    %c0_i32_42 = arith.constant 0 : i32
    %120 = vector.broadcast %c0_i32_42 : i32 to vector<8x1xi32>
    %121 = arith.cmpi eq, %119, %120 : vector<8x1xi32>
    %cst_43 = arith.constant 1.500000e+00 : f32
    %cst_44 = arith.constant 1.000000e+00 : f32
    %122 = vector.broadcast %cst_43 : f32 to vector<8x1xf32>
    %123 = vector.broadcast %cst_44 : f32 to vector<8x1xf32>
    %124 = arith.select %121, %122, %123 : vector<8x1xi1>, vector<8x1xf32>
    %125 = vector.broadcast %124 : vector<8x1xf32> to vector<8x128xf32>
    %126 = arith.mulf %125, %118 : vector<8x128xf32>
    %127 = arith.mulf %126, %105 : vector<8x128xf32>
    %cst_45 = arith.constant dense<0.000000e+00> : vector<128xf32>
    %128 = vector.multi_reduction <add>, %127, %cst_45 [0] : vector<8x128xf32> to vector<128xf32>
    %129 = vector.shape_cast %128 : vector<128xf32> to vector<1x128xf32>
    %cst_46 = arith.constant 0.000000e+00 : f32
    %130 = vector.broadcast %cst_46 : f32 to vector<1x128xf32>
    %131 = arith.subf %130, %129 : vector<1x128xf32>
    %132 = arith.mulf %131, %19 : vector<1x128xf32>
    %133 = tpu.concatenate %93, %89, %132, %23 in 0 : vector<1x128xf32>, vector<1x128xf32>, vector<1x128xf32>, vector<1x128xf32> -> vector<4x128xf32>
    %c0_47 = arith.constant 0 : index
    %c0_48 = arith.constant 0 : index
    %c0_49 = arith.constant 0 : index
    %134 = vector.load %arg6[%c0_47, %c0_48, %c0_49] : memref<1x4x128xf32, #tpu.memory_space<vmem>>, vector<1x4x128xf32>
    %135 = vector.shape_cast %134 : vector<1x4x128xf32> to vector<4x128xf32>
    %136 = vector.shape_cast %133 : vector<4x128xf32> to vector<1x4x128xf32>
    tpu.vector_store %arg6[%c0_47, %c0_48, %c0_49], %136 {strides = array<i32>} : memref<1x4x128xf32, #tpu.memory_space<vmem>>, vector<1x4x128xf32>,
    %137 = tpu.iota {dimensions = array<i32: 1>} : vector<1x128xi32>
    %c0_i32_50 = arith.constant 0 : i32
    %138 = vector.broadcast %c0_i32_50 : i32 to vector<1x128xi32>
    %139 = arith.cmpi eq, %137, %138 : vector<1x128xi32>
    %cst_51 = arith.constant 0.000000e+00 : f32
    %140 = vector.shape_cast %29 : vector<1x1xf32> to vector<1x1xf32>
    %141 = vector.broadcast %140 : vector<1x1xf32> to vector<1x128xf32>
    %142 = vector.broadcast %cst_51 : f32 to vector<1x128xf32>
    %143 = arith.select %139, %141, %142 : vector<1x128xi1>, vector<1x128xf32>
    %cst_52 = arith.constant 0.000000e+00 : f32
    %144 = vector.shape_cast %35 : vector<1x1xf32> to vector<1x1xf32>
    %145 = vector.broadcast %144 : vector<1x1xf32> to vector<1x128xf32>
    %146 = vector.broadcast %cst_52 : f32 to vector<1x128xf32>
    %147 = arith.select %139, %145, %146 : vector<1x128xi1>, vector<1x128xf32>
    %cst_53 = arith.constant 0.000000e+00 : f32
    %148 = vector.shape_cast %51 : vector<1x1xf32> to vector<1x1xf32>
    %149 = vector.broadcast %148 : vector<1x1xf32> to vector<1x128xf32>
    %150 = vector.broadcast %cst_53 : f32 to vector<1x128xf32>
    %151 = arith.select %139, %149, %150 : vector<1x128xi1>, vector<1x128xf32>
    %cst_54 = arith.constant 0.000000e+00 : f32
    %152 = vector.shape_cast %58 : vector<1x1xf32> to vector<1x1xf32>
    %153 = vector.broadcast %152 : vector<1x1xf32> to vector<1x128xf32>
    %154 = vector.broadcast %cst_54 : f32 to vector<1x128xf32>
    %155 = arith.select %139, %153, %154 : vector<1x128xi1>, vector<1x128xf32>
    %cst_55 = arith.constant 0.000000e+00 : f32
    %156 = vector.shape_cast %66 : vector<1x1xf32> to vector<1x1xf32>
    %157 = vector.broadcast %156 : vector<1x1xf32> to vector<1x128xf32>
    %158 = vector.broadcast %cst_55 : f32 to vector<1x128xf32>
    %159 = arith.select %139, %157, %158 : vector<1x128xi1>, vector<1x128xf32>
    %cst_56 = arith.constant 0.000000e+00 : f32
    %160 = vector.shape_cast %70 : vector<1x1xf32> to vector<1x1xf32>
    %161 = vector.broadcast %160 : vector<1x1xf32> to vector<1x128xf32>
    %162 = vector.broadcast %cst_56 : f32 to vector<1x128xf32>
    %163 = arith.select %139, %161, %162 : vector<1x128xi1>, vector<1x128xf32>
    %cst_57 = arith.constant 0.000000e+00 : f32
    %164 = vector.broadcast %cst_57 : f32 to vector<2x128xf32>
    %165 = tpu.concatenate %143, %147, %151, %155, %159, %163, %164 in 0 : vector<1x128xf32>, vector<1x128xf32>, vector<1x128xf32>, vector<1x128xf32>, vector<1x128xf32>, vector<1x128xf32>, vector<2x128xf32> -> vector<8x128xf32>
    %c0_58 = arith.constant 0 : index
    %c0_59 = arith.constant 0 : index
    %c0_60 = arith.constant 0 : index
    %c0_61 = arith.constant 0 : index
    %166 = vector.load %arg7[%c0_58, %c0_59, %c0_60, %c0_61] : memref<1x1x8x128xf32, #tpu.memory_space<vmem>>, vector<1x1x8x128xf32>
    %167 = vector.shape_cast %166 : vector<1x1x8x128xf32> to vector<8x128xf32>
    %168 = vector.shape_cast %165 : vector<8x128xf32> to vector<1x1x8x128xf32>
    tpu.vector_store %arg7[%c0_58, %c0_59, %c0_60, %c0_61], %168 {strides = array<i32>} : memref<1x1x8x128xf32, #tpu.memory_space<vmem>>, vector<1x1x8x128xf32>,
    return
  }
  func.func @transform_0(%arg0: i32, %arg1: i32) -> (i32, i32, i32) {
    %c0_i32 = arith.constant 0 : i32
    %c0_i32_0 = arith.constant 0 : i32
    return %arg0, %c0_i32, %arg1 : i32, i32, i32
  }
  func.func @transform_1(%arg0: i32, %arg1: i32) -> (i32, i32, i32) {
    %c0_i32 = arith.constant 0 : i32
    %c0_i32_0 = arith.constant 0 : i32
    return %arg0, %c0_i32, %arg1 : i32, i32, i32
  }
  func.func @transform_2(%arg0: i32, %arg1: i32) -> (i32, i32, i32) {
    %c0_i32 = arith.constant 0 : i32
    %c0_i32_0 = arith.constant 0 : i32
    return %arg0, %c0_i32, %arg1 : i32, i32, i32
  }
  func.func @transform_3(%arg0: i32, %arg1: i32) -> (i32, i32, i32) {
    %c0_i32 = arith.constant 0 : i32
    %c0_i32_0 = arith.constant 0 : i32
    return %arg0, %c0_i32, %arg1 : i32, i32, i32
  }
  func.func @transform_4(%arg0: i32, %arg1: i32) -> (i32, i32, i32) {
    %c0_i32 = arith.constant 0 : i32
    %c0_i32_0 = arith.constant 0 : i32
    return %arg0, %c0_i32, %arg1 : i32, i32, i32
  }
  func.func @transform_5(%arg0: i32, %arg1: i32) -> (i32, i32, i32, i32) {
    %c0_i32 = arith.constant 0 : i32
    %c0_i32_0 = arith.constant 0 : i32
    %c0_i32_1 = arith.constant 0 : i32
    return %arg0, %arg1, %c0_i32, %c0_i32_0 : i32, i32, i32, i32
  }
}

</mosaic_0001>

<bundles_post_ra>
// kernel: tpu_custom_call.1
= control target key start
LH: loop header
LB: loop body
LE: loop exit
PB: predicated region body
PF: predicated region fallthrough
CT: control target
= control target key end

     0   :  { %11 = vsyncpa [#allocation3], 0  ;;  %s1175_s0 = inlined_call_operand.vmem [shape: f32[2,12,128], index: 0, kind: input, shape index: {}]   ;;  %s1176_s1 = inlined_call_operand.vmem [shape: f32[2,8,128], index: 1, kind: input, shape index: {}]   ;;  %s1177_s2 = inlined_call_operand.vmem [shape: f32[2,8,128], index: 2, kind: input, shape index: {}]   ;;  %s1178_s3 = inlined_call_operand.vmem [shape: s32[2,1,128], index: 3, kind: input, shape index: {}]   ;;  %s1179_s4 = inlined_call_operand.hbm [shape: f32[2,4,128], index: 4, kind: output, shape index: {0}]   ;;  %s1180_s5 = inlined_call_operand.hbm [shape: f32[2,1,8,128], index: 5, kind: output, shape index: {1}]  }
   0x1   :  { %13 = vsyncpa [#allocation3 + $0x1], 0 }
   0x2   :  { %14 = vsyncpa [#allocation5], 0 }
   0x3   :  { %16 = vsyncpa [#allocation5 + $0x1], 0  ;;  %s969_s18 = smov 0   ;;  %s971_s19 = smov 0  }
   0x4   :  { %s973_s20 = smov 0   ;;  %s975_s21 = smov 0  }
   0x5   :  { %s977_s22 = smov 0   ;;  %s979_s23 = smov 0  }
   0x6 LB: > { %s732_s24 = sadd.s32 4294967295, %s933_s23   ;;  %s733_s25 = sadd.s32 4294967294, %s933_s23   ;;  %s933_s23 = sphi %s979_s23, %s22_s23   ;;  %s929_s22 = sphi %s977_s22, %s1187_s22   ;;  %s925_s21 = sphi %s975_s21, %s1186_s21   ;;  %s921_s20 = sphi %s973_s20, %s1185_s20   ;;  %s917_s19 = sphi %s971_s19, %s1184_s19   ;;  %s913_s18 = sphi %s969_s18, %s1183_s18  }
   0x7   : > { %s34_s26 = sadd.s32 1, %s929_s22  ;;  %s155_s27 = sadd.s32 1, %s921_s20 }
   0x8   : > { %p36_p0 = scmp.ge.s32.totalorder %s34_s26, 2  ;;  %p165_p1 = scmp.ne.s32.totalorder %s921_s20, %s917_s19 }
   0x9   : > { %p166_p2 = scmp.eq.s32.totalorder %s732_s24, 1  ;;  %p171_p3 = scmp.ne.s32.totalorder %s917_s19, %s913_s18 }
   0xa   : > { %s1189_s26 = smov (%p36_p0, %s34_s26), 0  ;;  %p172_p5 = scmp.eq.s32.totalorder %s733_s25, 1 }
   0xb   : > { %p1009_p4 = por %p166_p2, %p165_p1  ;;  %s150_s29 = ssub.s32 %s929_s22, %s1189_s26 }
   0xc   : > { %p736_p6 = scmp.ge.s32.totalorder %s933_s23, 1  ;;  %p153_p7 = scmp.eq.s32.totalorder %s150_s29, 0 }
   0xd   : > { %p1016_p8 = por %p172_p5, %p171_p3  ;;  %p258_p9 = scmp.lt.s32.totalorder %s933_s23, 3 }
   0xe   : > { %s1022_s6 = scalar_select %p153_p7, %s921_s20, %s155_s27  }
   0xf   : > { %p259_p10 = pnand %p736_p6, %p258_p9 }
  0x10   : > { %p314_p11 = scmp.lt.s32.totalorder (!%p259_p10), %s925_s21, 1  ;;  %s748_s9 = sshll.u32 (!%p259_p10), %s925_s21, 6 }
  0x11   : > { %262 = sbr.rel (%p259_p10) target bundleno = 213 (0xd5), region = 36 }
  0x16   : > { %v348_v0 = vlaneseq  ;;  %s315_s7 = scalar_select %p314_p11, %s925_s21, 1  ;;  %vm361_vm1 = vcmask 1043456   ;;  %v935_v19 = vmov 0.0   ;;  %vm431_vm3 = vcmask 1040384  }
  0x17   : > { %vm525_vm7 = vcmask 1041408   ;;  %vm527_vm8 = vcmask 1042432  }
  0x18   : > { %v1027_v1 = vshrl.u32 %v348_v0, 7  ;;  %s741_s8 = sshll.u32 %s315_s7, 3  ;;  %s341_s11 = scalar_lea.vmem %s1178_s3, %s315_s7 }
  0x19   : > { %s328_s14 = scalar_lea.vmem %s1176_s1, %s741_s8  ;;  %s335_s17 = scalar_lea.vmem %s1177_s2, %s741_s8  ;;  %v1038_v2 = vld [vmem:[%s341_s11] sm:$0x1] }
  0x1a   : > { %v1040_v3 = vld [vmem:[%s328_s14] sm:$0xff]  ;;  %s752_s24 = sshll.u32 %s315_s7, 4  ;;  %vm356_vm0 = vcmp.gt.s32.totalorder %v1038_v2, 0  ;;  %v392_v5 = vsub.s32 0, %v1027_v1  ;;  %vm512_vm5 = vcmp.eq.s32.totalorder %v1027_v1, 0  ;;  %s1083_s7 = sand.u32 1, %s917_s19  }
  0x1b   : > { %v346_v4 = vld [vmem:[%s335_s17] sm:$0xff]  ;;  %v436_v7 = vrot.slane %v1040_v3, 4  ;;  %v474_v8 = vmul.f32 0.5, %v1040_v3  ;;  %s321_s29 = scalar_lea.vmem %s1175_s0, %s752_s24  ;;  %v1054_v20 = vsel %vm356_vm0, 1.0, %v935_v19  ;;  %s737_s8 = sshll.u32 %s1083_s7, 2 }
  0x1c   : > { %v372_v6 = vsub.f32 %v1040_v3, %v346_v4  ;;  %v493_v9 = vmul.f32 0.5, %v346_v4  ;;  %v342_v10 = vld [vmem:[%s321_s29] sm:$0xf]  ;;  %v343_v11 = vld [vmem:[%s321_s29 + $0x4] sm:$0xf]  ;;  %v1059_v24 = vrot.slane %v1054_v20, %v392_v5  ;;  %v432_v58 = vsel %vm431_vm3, %v1054_v20, 0.0  ;;  %s1093_s14 = scalar_lea.hbm %s1179_s4, %s748_s9 }
  0x1d   : > { %v344_v12 = vld [vmem:[%s321_s29 + $0x8] sm:$0xf]  ;;  %v437_v14 = vmax.f32 %v1040_v3, %v436_v7  ;;  %v475_v15 = vrot.slane %v474_v8, 4  ;;  %v359_v17 = vsub.f32 %v342_v10, %v343_v11  ;;  %v459_v7 = vrot.slane %v1038_v2, %v392_v5  ;;  %s306_s10 = scalar_lea.vmem [#allocation2], %s737_s8  ;;  %s550_s15 = scalar_lea.sflag [#allocation3], %s1083_s7 }
  0x1e   : > { %v373_v13 = vmul.f32 %v372_v6, %v372_v6  ;;  %v494_v16 = vrot.slane %v493_v9, 4  ;;  %v382_v18 = vsub.f32 %v342_v10, %v344_v12  ;;  %v418_v28 = vsub.f32 %v343_v11, %v344_v12  ;;  %s569_s11 = sshll.u32 %s306_s10, 4  ;;  %s937_s17 = smov [#allocation2]   ;;  %s570_s11 = int_to_ptr.vmem [resolvable:$true] %s569_s11 }
  0x1f   : > { %v438_v21 = vrot.slane %v437_v14, 2  ;;  %v476_v22 = vmax.f32 %v474_v8, %v475_v15  ;;  %v360_v25 = vmul.f32 %v359_v17, %v359_v17  ;;  %vm460_vm4 = vcmp.eq.s32.totalorder %v1027_v1, %v459_v7  ;;  %s827_s16 = scalar_lea.vmem %s570_s11, 64  ;;  %s831_s24 = sshll.u32 %s937_s17, 4  ;;  %s832_s24 = int_to_ptr.vmem [resolvable:$false] %s831_s24 }
  0x20   : > { %v495_v23 = vmax.f32 %v493_v9, %v494_v16  ;;  %374 = vadd.xlane.f32.xlu0 %v373_v13  ;;  %v383_v26 = vand.u32 2147483647, %v382_v18  ;;  %v385_v27 = vmul.f32 0.5, %v382_v18  ;;  %v406_v32 = vmul.f32 %v382_v18, %v382_v18  ;;  %p828_p12 = scmp.ne.s32.totalorder %s570_s11, %s827_s16  ;;  %s833_s25 = scalar_lea.vmem %s832_s24, 128 }
  0x21   : > { %v439_v29 = vmax.f32 %v437_v14, %v438_v21  ;;  %v477_v30 = vrot.slane %v476_v22, 2  ;;  %v362_v33 = vsel %vm361_vm1, %v360_v25, 0.0  ;;  %v419_v39 = vmul.f32 %v418_v28, %v418_v28  ;;  %p834_p1 = scmp.lt.s32.totalorder %s570_s11, %s832_s24  ;;  %p835_p2 = scmp.lt.s32.totalorder %s833_s25, %s827_s16 }
  0x22   : > { %v496_v31 = vrot.slane %v495_v23, 2  ;;  %vm384_vm2 = vcmp.lt.f32.partialorder %v383_v26, 1.0  ;;  %v386_v34 = vmul.f32 %v385_v27, %v382_v18  ;;  %v744_v35 = vadd.f32 -0.5, %v383_v26  ;;  %p829_p13 = pnand %p828_p12, %p1009_p4 }
  0x23   : > { %v440_v36 = vrot.slane %v439_v29, 1  ;;  %v478_v37 = vmax.f32 %v476_v22, %v477_v30  ;;  %v407_v41 = vmul.f32 %v406_v32, %v1059_v24  ;;  %v420_v46 = vmul.f32 %v419_v39, %v1059_v24  ;;  %p836_p3 = por %p835_p2, %p834_p1 }
  0x24   : > { %v497_v38 = vmax.f32 %v495_v23, %v496_v31  ;;  %363 = vadd.xlane.f32.xlu0 %v362_v33  ;;  %v388_v40 = vsel %vm384_vm2, %v386_v34, %v744_v35  ;;  %v745_v18 = vsel %vm460_vm4, 1.0, %v935_v19  ;;  %v936_v33 = vmov 1.0   ;;  %p830_p0 = pneg %p829_p13 }
  0x25   : > { %v1063_v42 = vmax.f32 %v439_v29, %v440_v36  ;;  %v479_v43 = vrot.slane %v478_v37, 1  ;;  %v395_v45 = vmul.f32 %v1059_v24, %v388_v40  ;;  %v421_v51 = vsel %vm361_vm1, %v420_v46, 0.0 }
  0x26   : > { %v498_v44 = vrot.slane %v497_v38, 1  ;;  %v408_v55 = vsel %vm361_vm1, %v407_v41, 0.0  ;;  %v463_v25 = vmul.f32 %v745_v18, %v1040_v3  ;;  %v513_v34 = vsel %vm512_vm5, 1.5, %v936_v33  ;;  %p837_p5 = pnand %p836_p3, %p830_p0 }
  0x27   : > { %v442_v47 = vsub.f32 %v1040_v3, %v1063_v42  ;;  %v480_v48 = vmax.f32 %v478_v37, %v479_v43  ;;  %v396_v50 = vsel %vm361_vm1, %v395_v45, 0.0  ;;  %vm472_vm6 = vcmp.gt.f32.partialorder %v1054_v20, 0.0 }
  0x28   : > { %v499_v49 = vmax.f32 %v497_v38, %v498_v44  ;;  %397 = vadd.xlane.f32.xlu1 %v396_v50  ;;  %422 = vadd.xlane.f32.xlu0 %v421_v51  ;;  %v464_v5 = vrot.slane %v463_v25, 4 }
  0x29   : > { %v443_v52 = vmul.f32 1.442695, %v442_v47  ;;  %v481_v53 = vsub.f32 %v474_v8, %v480_v48 }
  0x2a   : > { %v500_v54 = vsub.f32 %v493_v9, %v499_v49  ;;  %v465_v26 = vadd.f32 %v464_v5, %v463_v25 }
  0x2b   : > { %815 = vpow2.f32 %v443_v52  ;;  %v482_v56 = vmul.f32 1.442695, %v481_v53 }
  0x2c   : > { %v501_v57 = vmul.f32 1.442695, %v500_v54  ;;  %409 = vadd.xlane.f32.xlu1 %v408_v55  ;;  %v466_v27 = vrot.slane %v465_v26, 2 }
  0x2d   : > { %817 = vpow2.f32 %v482_v56 }
  0x2e   : > { %819 = vpow2.f32 %v501_v57  ;;  %v467_v31 = vadd.f32 %v466_v27, %v465_v26 }
  0x30   : > { %433 = vadd.xlane.f32.xlu1 %v432_v58  ;;  %v468_v37 = vrot.slane %v467_v31, 1 }
  0x32   : > { %v469_v41 = vadd.f32 %v468_v37, %v467_v31 }
  0x38   : > { %v816_v59 = vpop.eup %815 }
  0x39   : > { %v445_v60 = vrot.slane %v816_v59, 4 }
  0x3a   : > { %v818_v61 = vpop.eup %817 }
  0x3b   : > { %v820_v62 = vpop.eup %819  ;;  %v484_v63 = vrot.slane %v818_v61, 4  ;;  %v446_v4 = vadd.f32 %v816_v59, %v445_v60 }
  0x3c   : > { %v503_v6 = vrot.slane %v820_v62, 4 }
  0x3d   : > { %v485_v8 = vadd.f32 %v818_v61, %v484_v63  ;;  %v447_v9 = vrot.slane %v446_v4, 2 }
  0x3e   : > { %v504_v10 = vadd.f32 %v820_v62, %v503_v6 }
  0x3f   : > { %v486_v11 = vrot.slane %v485_v8, 2  ;;  %v448_v12 = vadd.f32 %v447_v9, %v446_v4 }
  0x40   : > { %v505_v13 = vrot.slane %v504_v10, 2 }
  0x41   : > { %v487_v14 = vadd.f32 %v486_v11, %v485_v8  ;;  %v449_v15 = vrot.slane %v448_v12, 1 }
  0x42   : > { %v506_v16 = vadd.f32 %v505_v13, %v504_v10 }
  0x43   : > { %v488_v17 = vrot.slane %v487_v14, 1  ;;  %v450_v23 = vadd.f32 %v449_v15, %v448_v12 }
  0x44   : > { %v507_v21 = vrot.slane %v506_v16, 1 }
  0x45   : > { %v489_v22 = vadd.f32 %v488_v17, %v487_v14 }
  0x46   : > { %v508_v2 = vadd.f32 %v507_v21, %v506_v16 }
  0x47   : > { %821 = vlog2.f32 %v489_v22 }
  0x48   : > { %823 = vrcp.f32 %v508_v2 }
  0x49   : > { %825 = vlog2.f32 %v450_v23 }
  0x54   : > { %v822_v28 = vpop.eup %821 }
  0x55   : > { %v824_v29 = vpop.eup %823  ;;  %v491_v30 = vmul.f32 0.6931472, %v822_v28 }
  0x56   : > { %v510_v19 = vmul.f32 %v824_v29, %v820_v62  ;;  %v826_v32 = vpop.eup %825 }
  0x57   : > { %v492_v35 = vsub.f32 %v481_v53, %v491_v30  ;;  %v452_v36 = vmul.f32 0.6931472, %v826_v32 }
  0x58   : > { %v511_v3 = vadd.f32 1e-10, %v510_v19 }
  0x59   : > { %v453_v40 = vadd.f32 %v452_v36, %v1063_v42 }
  0x5a   : > { %v514_v38 = vmul.f32 %v513_v34, %v511_v3 }
  0x5b   : > { %v470_v44 = vsub.f32 %v453_v40, %v469_v41 }
  0x5c   : > { %v515_v39 = vmul.f32 %v514_v38, %v492_v35 }
  0x5d   : > { %v473_v47 = vsel %vm472_vm6, 0.0, %v470_v44 }
  0x5e   : > { %v516_v43 = vrot.slane %v515_v39, 4  ;;  %v524_v50 = vsel %vm431_vm3, %v473_v47, %v470_v44 }
  0x60   : > { %v517_v1 = vadd.f32 %v516_v43, %v515_v39 }
  0x62   : > { %v518_v45 = vrot.slane %v517_v1, 2 }
  0x64   : > { %v519_v46 = vadd.f32 %v518_v45, %v517_v1 }
  0x66   : > { %v520_v48 = vrot.slane %v519_v46, 1 }
  0x68   : > { %v521_v49 = vadd.f32 %v520_v48, %v519_v46 }
  0x6a   : > { %v522_v42 = vsub.f32 0.0, %v521_v49 }
  0x6c   : > { %v526_v51 = vsel %vm525_vm7, %v524_v50, %v522_v42 }
  0x6d   : > { %v528_v20 = vsel %vm527_vm8, %v526_v51, %v1059_v24 }
  0x6e   : > { %529 = vst [vmem:[%s306_s10] sm:$0xf] %v528_v20 }
  0x6f   : > { %840 = shalt.err (!%p837_p5)
}
  0x70   : > { %s841_s27 = scalar_lea.hbm %s1093_s14, 64  ;;  %s845_s9 = scalar_lea.hbm %s1179_s4, 128 }
  0x71   : > { %p842_p6 = scmp.ne.s32.totalorder %s1093_s14, %s841_s27  ;;  %p846_p10 = scmp.lt.s32.totalorder %s1093_s14, %s1179_s4 }
  0x72   : > { %p847_p11 = scmp.lt.s32.totalorder %s845_s9, %s841_s27 }
  0x73   : > { %p843_p7 = pnand %p842_p6, %p1009_p4 }
  0x74   : > { %p848_p12 = por %p847_p11, %p846_p10 }
  0x75   : > { %p844_p9 = pneg %p843_p7 }
  0x77   : > { %p849_p13 = pnand %p848_p12, %p844_p9 }
  0x79   : > { %852 = shalt.err (!%p849_p13)
}
  0x7a   : > { %753 = dma.vmem_to_hbm [thread:$0]  (%p1009_p4), %s570_s11, 64, %s1093_s14, %s550_s15   ;;  %v349_v17 = vand.u32 127, %v348_v0  ;;  %vm544_vm10 = vcmask 1044480   ;;  %vm546_vm11 = vcmask 1045504  }
  0x7b   : > { %s738_s11 = sshll.u32 %s1083_s7, 3  ;;  %s749_s13 = sshll.u32 %s925_s21, 7 }
  0x7c   : > { %vm530_vm9 = vcmp.eq.s32.totalorder %v349_v17, 0  ;;  %s313_s14 = scalar_lea.vmem [#allocation4], %s738_s11  ;;  %s1134_s24 = scalar_lea.hbm %s1180_s5, %s749_s13 }
  0x7d   : > { %s583_s15 = sshll.u32 %s313_s14, 4  ;;  %s555_s25 = scalar_lea.sflag [#allocation5], %s1083_s7  ;;  %s584_s15 = int_to_ptr.vmem [resolvable:$true] %s583_s15 }
  0x7e   : > { %s853_s21 = scalar_lea.vmem %s584_s15, 128  ;;  %s938_s27 = smov [#allocation4]  }
  0x7f   : > { %p854_p0 = scmp.ne.s32.totalorder %s584_s15, %s853_s21  ;;  %s857_s29 = sshll.u32 %s938_s27, 4  ;;  %s858_s29 = int_to_ptr.vmem [resolvable:$false] %s857_s29 }
  0x80   : > { %s859_s8 = scalar_lea.vmem %s858_s29, 256  ;;  %p860_p3 = scmp.lt.s32.totalorder %s584_s15, %s858_s29 }
  0x81   : > { %p855_p1 = pnand %p854_p0, %p1009_p4  ;;  %p861_p5 = scmp.lt.s32.totalorder %s859_s8, %s853_s21 }
  0x83   : > { %p856_p2 = pneg %p855_p1  ;;  %p862_p6 = por %p861_p5, %p860_p3 }
  0x85   : > { %p863_p7 = pnand %p862_p6, %p856_p2 }
  0xa9   : > { %v375_v24 = vpop.xlane.xlu0 %374 }
  0xaa   : > { %v376_v52 = vrot.slane %v375_v24, 4 }
  0xac   : > { %v377_v53 = vadd.f32 %v376_v52, %v375_v24 }
  0xad   : > { %v364_v54 = vpop.xlane.xlu0 %363 }
  0xae   : > { %v365_v55 = vsel %vm361_vm1, %v364_v54, 0.0  ;;  %v378_v57 = vrot.slane %v377_v53, 2 }
  0xaf   : > { %v366_v56 = vrot.slane %v365_v55, 4 }
  0xb0   : > { %v379_v63 = vadd.f32 %v378_v57, %v377_v53 }
  0xb1   : > { %v367_v58 = vadd.f32 %v366_v56, %v365_v55  ;;  %v398_v59 = vpop.xlane.xlu1 %397  ;;  %v423_v62 = vpop.xlane.xlu0 %422 }
  0xb2   : > { %v399_v61 = vsel %vm361_vm1, %v398_v59, 0.0  ;;  %v424_v6 = vsel %vm361_vm1, %v423_v62, 0.0  ;;  %v380_v14 = vrot.slane %v379_v63, 1 }
  0xb3   : > { %v368_v60 = vrot.slane %v367_v58, 2  ;;  %v400_v4 = vrot.slane %v399_v61, 4  ;;  %v425_v8 = vrot.slane %v424_v6, 4 }
  0xb4   : > { %v381_v2 = vadd.f32 %v380_v14, %v379_v63 }
  0xb5   : > { %v369_v7 = vadd.f32 %v368_v60, %v367_v58  ;;  %v401_v9 = vadd.f32 %v400_v4, %v399_v61  ;;  %v410_v10 = vpop.xlane.xlu1 %409  ;;  %v426_v12 = vadd.f32 %v425_v8, %v424_v6 }
  0xb6   : > { %v411_v13 = vsel %vm361_vm1, %v410_v10, 0.0  ;;  %v532_v19 = vsel %vm530_vm9, %v381_v2, 0.0 }
  0xb7   : > { %v370_v11 = vrot.slane %v369_v7, 1  ;;  %v402_v15 = vrot.slane %v401_v9, 2  ;;  %v412_v16 = vrot.slane %v411_v13, 4  ;;  %v427_v18 = vrot.slane %v426_v12, 2 }
  0xb9   : > { %v371_v21 = vadd.f32 %v370_v11, %v369_v7  ;;  %v403_v22 = vadd.f32 %v402_v15, %v401_v9  ;;  %v413_v23 = vadd.f32 %v412_v16, %v411_v13  ;;  %v428_v25 = vadd.f32 %v427_v18, %v426_v12  ;;  %v434_v28 = vpop.xlane.xlu1 %433 }
  0xba   : > { %v536_v32 = vsel %vm530_vm9, %v434_v28, 0.0 }
  0xbb   : > { %v404_v5 = vrot.slane %v403_v22, 1  ;;  %v414_v26 = vrot.slane %v413_v23, 2  ;;  %v429_v27 = vrot.slane %v428_v25, 1  ;;  %v531_v29 = vsel %vm530_vm9, %v371_v21, 0.0 }
  0xbc   : > { %v540_v33 = vsel %vm431_vm3, %v531_v29, %v532_v19  ;;  %v538_v36 = vrot.slane %v536_v32, 3 }
  0xbd   : > { %v405_v30 = vadd.f32 %v404_v5, %v403_v22  ;;  %v415_v31 = vadd.f32 %v414_v26, %v413_v23  ;;  %v430_v35 = vadd.f32 %v429_v27, %v428_v25 }
  0xbf   : > { %v416_v0 = vrot.slane %v415_v31, 1  ;;  %v533_v34 = vsel %vm530_vm9, %v405_v30, 0.0  ;;  %v535_v39 = vsel %vm530_vm9, %v430_v35, 0.0 }
  0xc0   : > { %v541_v38 = vsel %vm525_vm7, %v540_v33, %v533_v34 }
  0xc1   : > { %v417_v3 = vadd.f32 %v416_v0, %v415_v31 }
  0xc3   : > { %v534_v37 = vsel %vm530_vm9, %v417_v3, 0.0 }
  0xc4   : > { %v542_v40 = vsel %vm527_vm8, %v541_v38, %v534_v37 }
  0xc5   : > { %v543_v41 = vsel %vm361_vm1, %v542_v40, %v535_v39 }
  0xc6   : > { %v545_v43 = vsel %vm544_vm10, %v543_v41, %v538_v36 }
  0xc7   : > { %v547_v1 = vsel %vm546_vm11, %v545_v43, 0.0 }
  0xc8   : > { %548 = vst [vmem:[%s313_s14] sm:$0xff] %v547_v1 }
  0xc9   : > { %866 = shalt.err (!%p863_p7)
}
  0xca   : > { %s867_s9 = scalar_lea.hbm %s1134_s24, 128  ;;  %s871_s12 = scalar_lea.hbm %s1180_s5, 256 }
  0xcb   : > { %p868_p9 = scmp.ne.s32.totalorder %s1134_s24, %s867_s9  ;;  %p872_p12 = scmp.lt.s32.totalorder %s1134_s24, %s1180_s5 }
  0xcc   : > { %p873_p13 = scmp.lt.s32.totalorder %s871_s12, %s867_s9 }
  0xcd   : > { %p869_p10 = pnand %p868_p9, %p1009_p4 }
  0xce   : > { %p874_p0 = por %p873_p13, %p872_p12 }
  0xcf   : > { %p870_p11 = pneg %p869_p10 }
  0xd1   : > { %p875_p1 = pnand %p874_p0, %p870_p11 }
  0xd3   : > { %878 = shalt.err (!%p875_p1)
}
  0xd4   : > { %754 = dma.vmem_to_hbm [thread:$0]  (%p1009_p4), %s584_s15, 128, %s1134_s24, %s555_s25  }
  0xd5 PF: > { %p764_p2 = scmp.ge.s32.totalorder %s933_s23, 2  ;;  %s595_s14 = sand.u32 1, %s913_s18  }
  0xd6   : > { %s596_s16 = scalar_lea.sflag [#allocation3], %s595_s14 }
  0xd7   : > { %p758_p3 = pnand %p764_p2, %p1016_p8 }
  0xd9   : > { %p759_p5 = pneg %p758_p3 }
  0xdb   : > { %904 = dma.done.wait (%p759_p5), %s596_s16, 64  }
  0xdc   : > { %906 = vsyncadd (%p759_p5), %s596_s16, 4294967232  ;;  %s605_s17 = scalar_lea.sflag [#allocation5], %s595_s14 }
  0xdd   : > { %908 = dma.done.wait (%p759_p5), %s605_s17, 128  }
  0xde   : > { %910 = vsyncadd (%p759_p5), %s605_s17, 4294967168  ;;  %s22_s23 = sadd.s32 1, %s933_s23   ;;  %s1183_s18 = smov %s917_s19 }
  0xdf   : > { %p19_p6 = scmp.ge.s32.totalorder %s22_s23, 4   ;;  %s1184_s19 = smov %s921_s20 }
  0xe0   : > { %s1185_s20 = smov %s1022_s6  ;;  %s1186_s21 = smov %s929_s22 }
  0xe1   : > { %s1187_s22 = smov %s1189_s26  ;;  %21 = sbr.rel (!%p19_p6) target bundleno = 6 (0x6), region = 97 }
  0xe6   :  { %610 = vsyncpa [#allocation3], 1 }
  0xe7   :  { %612 = vsyncpa [#allocation3 + $0x1], 1 }
  0xe8   :  { %613 = vsyncpa [#allocation5], 1 }
  0xe9   :  { %615 = vsyncpa [#allocation5 + $0x1], 1 }

</bundles_post_ra>
